<compile_context>
chip_gen: v6e
topology: v6e:2x2x1
jax: 0.10.0
libtpu: 0.0.40
codegen_flags: <defaults>
</compile_context>

<pallas_src>
import functools

import jax
import jax.numpy as jnp
from jax.experimental import pallas as pl
from jax.experimental.pallas import tpu as pltpu

# VPPrecond hyperparameters (module defaults).
BETA_D = 19.9
BETA_MIN = 0.1
M_STEPS = 1000.0

# Synthetic inner-model width.
HIDDEN = 128


def _vp_precond_kernel(x_ref, w1b_ref, te_ref, w2b_ref,
                       cin_ref, cout_ref, cb_ref, o_ref, *, lane_chunk):
    """One grid step == one group of bb batch elements, fully vectorized.

    x_ref    : VMEM (bb*C, HW)          lane-dense in HW, 8-sublane-dense rows
    w1b_ref  : VMEM (bb*HIDDEN, bb*C)   kron(I_bb, W1^T)   (stationary weight)
    te_ref   : VMEM (bb*HIDDEN, 1)      c_noise_i*te_w + te_b, stacked per elem
    w2b_ref  : VMEM (bb*C, bb*HIDDEN)   kron(I_bb, W2^T)   (stationary weight)
    cin_ref  : VMEM (bb*C, 1)           c_in_i  repeated over channels
    cout_ref : VMEM (bb*C, 1)           c_out_i repeated over channels
    cb_ref   : VMEM (bb*C, 1)           c_out_i * b2_c
    o_ref    : VMEM (bb*C, HW)          D_x
    """
    hw = x_ref.shape[-1]
    n_chunks = hw // lane_chunk

    # Tiny grid-resident operands: loaded once per grid step.
    w1b = w1b_ref[...]
    w2b = w2b_ref[...]
    te = te_ref[...]
    cin = cin_ref[...]
    cout = cout_ref[...]
    cb = cb_ref[...]

    @pl.loop(0, n_chunks)
    def _(c):
        off = pl.multiple_of(c * lane_chunk, lane_chunk)
        xc = x_ref[:, pl.ds(off, lane_chunk)]                      # (bb*C, LC)
        # Layer 1 on the MXU (it has slack): hid_i = W1^T @ (c_in_i * x_i),
        # batched over the whole group via the block-diagonal weight; the
        # per-element time embedding is a column broadcast over lanes.
        hid = jnp.dot(w1b, cin * xc,
                      preferred_element_type=jnp.float32) + te     # (bb*H, LC)
        # SiLU: h*sigmoid(h) == 0.5*h*(tanh(0.5*h)+1)  -> one EUP push per vreg.
        hid = 0.5 * hid * (jnp.tanh(0.5 * hid) + 1.0)
        # Layer 2 on the MXU with the *unscaled*, stationary weight.
        fx = jnp.dot(w2b, hid, preferred_element_type=jnp.float32)  # (bb*C, LC)
        # D_x = x + c_out * (W2^T hid + b2), fused into one VPU pass.
        o_ref[:, pl.ds(off, lane_chunk)] = xc + cout * fx + cb


def _pick_lane_chunk(hw):
    for lc in (512, 256, 128):
        if hw % lc == 0:
            return lc
    return hw


def _vmem_estimate(bb, C, hw, hidden, lc):
    """Bytes of VMEM this kernel needs for a group size of bb (f32)."""
    xo = 2 * 2 * bb * C * hw * 4                    # x + out, double-buffered
    wts = 2 * 2 * (bb * hidden) * (bb * C) * 4      # block-diag w1/w2
    cols = 2 * 2 * (bb * hidden + 3 * bb * C) * 4   # te / cin / cout / cb cols
    hid = 3 * bb * hidden * lc * 4                  # hid + elementwise temps
    return xo + wts + cols + hid


def _pick_block_b(B, C, hw, hidden):
    """Pick the per-grid-step batch group size bb.

    Constraints: B % bb == 0; bb*C % 8 == 0 unless bb == B (sublane tiling
    rule); VMEM estimate <= 16 MiB (safe for v7x's 64 MiB physical / 32 MiB
    scoped and v5e's 16 MiB scoped once the limit is raised).  Preference:
    grid length >= 2 (both v7x TensorCores busy), then the largest bb.
    """
    lc = _pick_lane_chunk(hw)
    valid = [bb for bb in range(1, B + 1)
             if B % bb == 0 and ((bb * C) % 8 == 0 or bb == B)]
    fitting = [bb for bb in valid
               if bb <= 8 and _vmem_estimate(bb, C, hw, hidden, lc) <= (16 << 20)]
    pool = fitting if fitting else [min(valid)]
    return max(pool, key=lambda bb: ((B // bb) >= 2, bb))


def vp_precond(x_nchw, sigma, w1, te_w, te_b, w2, b2):
    """x_nchw: (B, C, H, W) f32; sigma: (B,) f32. Returns (B, C, H, W) f32."""
    x_nchw = x_nchw.astype(jnp.float32)
    sigma = sigma.astype(jnp.float32).reshape(-1)
    B, C, H, W = x_nchw.shape
    hw = H * W
    hidden = w1.shape[1]

    # Per-element preconditioning coefficients, computed once in the wrapper
    # (B tiny scalars; fuses with the reshape).  log1p for small-sigma fidelity.
    s2 = sigma * sigma
    c_out = -sigma                                            # c_skip == 1
    c_in = 1.0 / jnp.sqrt(s2 + 1.0)
    c_noise = (M_STEPS - 1.0) * (
        (jnp.sqrt(BETA_MIN * BETA_MIN + 2.0 * BETA_D * jnp.log1p(s2))
         - BETA_MIN) / BETA_D)

    bb = _pick_block_b(B, C, hw, hidden)
    lc = _pick_lane_chunk(hw)
    R, Hb = bb * C, bb * hidden

    # NCHW -> (B*C, HW): pure reshape (no transpose), lane dim = HW,
    # sublane rows dense in (batch, channel).
    x2 = x_nchw.reshape(B * C, hw)

    # Stationary block-diagonal weights (tiny, built once) and per-element
    # coefficient columns laid out to match the flattened row ordering.
    eye = jnp.eye(bb, dtype=jnp.float32)
    w1b = jnp.kron(eye, jnp.transpose(w1))                    # (bb*HID, bb*C)
    w2b = jnp.kron(eye, jnp.transpose(w2))                    # (bb*C, bb*HID)
    te_col = (c_noise[:, None] * te_w.reshape(1, -1)
              + te_b.reshape(1, -1)).reshape(B * hidden, 1)   # (B*HID, 1)
    cin_col = jnp.repeat(c_in, C).reshape(B * C, 1)           # (B*C, 1)
    cout_col = jnp.repeat(c_out, C).reshape(B * C, 1)         # (B*C, 1)
    cb_col = (c_out[:, None] * b2.reshape(1, -1)).reshape(B * C, 1)

    grid = (B // bb,)
    est = _vmem_estimate(bb, C, hw, hidden, lc)
    vmem_limit = int(min(48 << 20, max(32 << 20, 2 * est)))

    kernel = functools.partial(_vp_precond_kernel, lane_chunk=lc)

    out = pl.pallas_call(
        kernel,
        out_shape=jax.ShapeDtypeStruct((B * C, hw), jnp.float32),
        grid_spec=pltpu.PrefetchScalarGridSpec(
            num_scalar_prefetch=0,
            grid=grid,
            in_specs=[
                pl.BlockSpec((R, hw), lambda g: (g, 0)),      # x slab
                pl.BlockSpec((Hb, R), lambda g: (0, 0)),      # kron(I, w1^T)
                pl.BlockSpec((Hb, 1), lambda g: (g, 0)),      # time-emb column
                pl.BlockSpec((R, Hb), lambda g: (0, 0)),      # kron(I, w2^T)
                pl.BlockSpec((R, 1), lambda g: (g, 0)),       # c_in column
                pl.BlockSpec((R, 1), lambda g: (g, 0)),       # c_out column
                pl.BlockSpec((R, 1), lambda g: (g, 0)),       # c_out*b2 column
            ],
            out_specs=pl.BlockSpec((R, hw), lambda g: (g, 0)),
        ),
        compiler_params=pltpu.CompilerParams(
            dimension_semantics=("parallel",),
            vmem_limit_bytes=vmem_limit),
    )(x2, w1b, te_col, w2b, cin_col, cout_col, cb_col)

    # (B*C, HW) -> NCHW is a free reshape (no transpose).
    return out.reshape(B, C, H, W)


def _reference(x_nchw, sigma, w1, te_w, te_b, w2, b2):
    """Pure-JAX reference of the same forward, for a sanity check."""
    x = x_nchw.astype(jnp.float32)
    s = sigma.astype(jnp.float32).reshape(-1, 1, 1, 1)
    c_out = -s
    c_in = 1.0 / jnp.sqrt(s * s + 1.0)
    c_noise = (M_STEPS - 1.0) * (
        (jnp.sqrt(BETA_MIN ** 2 + 2.0 * BETA_D * jnp.log1p(s * s))
         - BETA_MIN) / BETA_D)
    hp = jax.lax.Precision.HIGHEST
    h = jnp.einsum("bchw,cd->bdhw", c_in * x, w1, precision=hp)
    h = h + c_noise * te_w.reshape(1, -1, 1, 1) + te_b.reshape(1, -1, 1, 1)
    h = h * jax.nn.sigmoid(h)
    f_x = jnp.einsum("bdhw,dc->bchw", h, w2, precision=hp) \
        + b2.reshape(1, -1, 1, 1)
    return x + c_out * f_x


if __name__ == "__main__":
    key = jax.random.PRNGKey(0)
    B, C, H, W = 2, 4, 16, 16

    k_x, k_s, k_w1, k_tw, k_tb, k_w2, k_b2 = jax.random.split(key, 7)
    x = jax.random.normal(k_x, (B, C, H, W), dtype=jnp.float32)
    sigma = jax.random.uniform(k_s, (B,), dtype=jnp.float32,
                               minval=0.1, maxval=2.0)

    # Deterministic synthetic inner-model parameters.
    w1 = 0.1 * jax.random.normal(k_w1, (C, HIDDEN), dtype=jnp.float32)
    te_w = 0.01 * jax.random.normal(k_tw, (1, HIDDEN), dtype=jnp.float32)
    te_b = 0.01 * jax.random.normal(k_tb, (1, HIDDEN), dtype=jnp.float32)
    w2 = 0.1 * jax.random.normal(k_w2, (HIDDEN, C), dtype=jnp.float32)
    b2 = 0.01 * jax.random.normal(k_b2, (1, C), dtype=jnp.float32)

    d_x = vp_precond(x, sigma, w1, te_w, te_b, w2, b2)
    jax.block_until_ready(d_x)

    ref = _reference(x, sigma, w1, te_w, te_b, w2, b2)
    assert d_x.shape == (B, C, H, W) and d_x.dtype == jnp.float32
    assert jnp.allclose(d_x, ref, atol=2e-4, rtol=2e-4)

    print("KERNEL_OK")
</pallas_src>

<mosaic_0001>
module attributes {stable_mosaic.version = 11 : i64} {
  func.func @_vp_precond_kernel(%arg0: i32, %arg1: memref<8x256xf32, #tpu.memory_space<vmem>>, %arg2: memref<256x8xf32, #tpu.memory_space<vmem>>, %arg3: memref<256x1xf32, #tpu.memory_space<vmem>>, %arg4: memref<8x256xf32, #tpu.memory_space<vmem>>, %arg5: memref<8x1xf32, #tpu.memory_space<vmem>>, %arg6: memref<8x1xf32, #tpu.memory_space<vmem>>, %arg7: memref<8x1xf32, #tpu.memory_space<vmem>>, %arg8: memref<8x256xf32, #tpu.memory_space<vmem>>) attributes {dimension_semantics = [#tpu.dimension_semantics<parallel>], iteration_bounds = array<i64: 1>, scalar_prefetch = 0 : i64, scratch_operands = 0 : i64, tpu.core_type = #tpu.core_type<tc>, window_params = [{transform_indices = @transform_0, window_bounds = array<i64: 8, 256>}, {pipeline_mode = #tpu.pipeline_mode<synchronous>, transform_indices = @transform_1, window_bounds = array<i64: 256, 8>}, {transform_indices = @transform_2, window_bounds = array<i64: 256, 1>}, {pipeline_mode = #tpu.pipeline_mode<synchronous>, transform_indices = @transform_3, window_bounds = array<i64: 8, 256>}, {transform_indices = @transform_4, window_bounds = array<i64: 8, 1>}, {transform_indices = @transform_5, window_bounds = array<i64: 8, 1>}, {transform_indices = @transform_6, window_bounds = array<i64: 8, 1>}, {transform_indices = @transform_7, window_bounds = array<i64: 8, 256>}]} {
    %c0 = arith.constant 0 : index
    %c0_0 = arith.constant 0 : index
    %0 = vector.load %arg2[%c0, %c0_0] : memref<256x8xf32, #tpu.memory_space<vmem>>, vector<256x8xf32>
    %c0_1 = arith.constant 0 : index
    %c0_2 = arith.constant 0 : index
    %1 = vector.load %arg4[%c0_1, %c0_2] : memref<8x256xf32, #tpu.memory_space<vmem>>, vector<8x256xf32>
    %c0_3 = arith.constant 0 : index
    %c0_4 = arith.constant 0 : index
    %2 = vector.load %arg3[%c0_3, %c0_4] : memref<256x1xf32, #tpu.memory_space<vmem>>, vector<256x1xf32>
    %c0_5 = arith.constant 0 : index
    %c0_6 = arith.constant 0 : index
    %3 = vector.load %arg5[%c0_5, %c0_6] : memref<8x1xf32, #tpu.memory_space<vmem>>, vector<8x1xf32>
    %c0_7 = arith.constant 0 : index
    %c0_8 = arith.constant 0 : index
    %4 = vector.load %arg6[%c0_7, %c0_8] : memref<8x1xf32, #tpu.memory_space<vmem>>, vector<8x1xf32>
    %c0_9 = arith.constant 0 : index
    %c0_10 = arith.constant 0 : index
    %5 = vector.load %arg7[%c0_9, %c0_10] : memref<8x1xf32, #tpu.memory_space<vmem>>, vector<8x1xf32>
    %c0_i32 = arith.constant 0 : i32
    %c1_i32 = arith.constant 1 : i32
    %6 = arith.muli %c0_i32, %c1_i32 : i32
    %c0_i32_11 = arith.constant 0 : i32
    %7 = arith.addi %c0_i32_11, %6 : i32
    %c256_i32 = arith.constant 256 : i32
    %8 = arith.muli %7, %c256_i32 : i32
    %9 = tpu.assume_multiple %8, 256 : i32
    %c0_12 = arith.constant 0 : index
    %10 = arith.index_cast %9 : i32 to index
    %11 = vector.load %arg1[%c0_12, %10] : memref<8x256xf32, #tpu.memory_space<vmem>>, vector<8x256xf32>
    %12 = vector.broadcast %3 : vector<8x1xf32> to vector<8x256xf32>
    %13 = arith.mulf %12, %11 : vector<8x256xf32>
    %cst = arith.constant dense<0.000000e+00> : vector<256x256xf32>
    %14 = tpu.matmul %0, %13, %cst {dimension_numbers = #tpu.dot_dimension_numbers<[1], [0], [0], [1], [0, 0, 1, 1], [], []>} : vector<256x8xf32>, vector<8x256xf32>, vector<256x256xf32> -> vector<256x256xf32>
    %15 = vector.broadcast %2 : vector<256x1xf32> to vector<256x256xf32>
    %16 = arith.addf %14, %15 : vector<256x256xf32>
    %cst_13 = arith.constant 5.000000e-01 : f32
    %17 = vector.broadcast %cst_13 : f32 to vector<256x256xf32>
    %18 = arith.mulf %17, %16 : vector<256x256xf32>
    %cst_14 = arith.constant 5.000000e-01 : f32
    %19 = vector.broadcast %cst_14 : f32 to vector<256x256xf32>
    %20 = arith.mulf %19, %16 : vector<256x256xf32>
    %21 = math.tanh %20 : vector<256x256xf32>
    %cst_15 = arith.constant 1.000000e+00 : f32
    %22 = vector.broadcast %cst_15 : f32 to vector<256x256xf32>
    %23 = arith.addf %21, %22 : vector<256x256xf32>
    %24 = arith.mulf %18, %23 : vector<256x256xf32>
    %cst_16 = arith.constant dense<0.000000e+00> : vector<8x256xf32>
    %25 = tpu.matmul %1, %24, %cst_16 {dimension_numbers = #tpu.dot_dimension_numbers<[1], [0], [0], [1], [0, 0, 1, 1], [], []>} : vector<8x256xf32>, vector<256x256xf32>, vector<8x256xf32> -> vector<8x256xf32>
    %26 = vector.broadcast %4 : vector<8x1xf32> to vector<8x256xf32>
    %27 = arith.mulf %26, %25 : vector<8x256xf32>
    %28 = arith.addf %11, %27 : vector<8x256xf32>
    %29 = vector.broadcast %5 : vector<8x1xf32> to vector<8x256xf32>
    %30 = arith.addf %28, %29 : vector<8x256xf32>
    %c0_17 = arith.constant 0 : index
    %31 = arith.index_cast %9 : i32 to index
    %32 = vector.load %arg8[%c0_17, %31] : memref<8x256xf32, #tpu.memory_space<vmem>>, vector<8x256xf32>
    tpu.vector_store %arg8[%c0_17, %31], %30 {strides = array<i32>} : memref<8x256xf32, #tpu.memory_space<vmem>>, vector<8x256xf32>,
    %c1_i32_18 = arith.constant 1 : i32
    return
  }
  func.func @transform_0(%arg0: i32) -> (i32, i32) {
    %c0_i32 = arith.constant 0 : i32
    %c0_i32_0 = arith.constant 0 : i32
    return %arg0, %c0_i32 : i32, i32
  }
  func.func @transform_1(%arg0: i32) -> (i32, i32) {
    %c0_i32 = arith.constant 0 : i32
    %c0_i32_0 = arith.constant 0 : i32
    %c0_i32_1 = arith.constant 0 : i32
    return %c0_i32, %c0_i32_0 : i32, i32
  }
  func.func @transform_2(%arg0: i32) -> (i32, i32) {
    %c0_i32 = arith.constant 0 : i32
    %c0_i32_0 = arith.constant 0 : i32
    return %arg0, %c0_i32 : i32, i32
  }
  func.func @transform_3(%arg0: i32) -> (i32, i32) {
    %c0_i32 = arith.constant 0 : i32
    %c0_i32_0 = arith.constant 0 : i32
    %c0_i32_1 = arith.constant 0 : i32
    return %c0_i32, %c0_i32_0 : i32, i32
  }
  func.func @transform_4(%arg0: i32) -> (i32, i32) {
    %c0_i32 = arith.constant 0 : i32
    %c0_i32_0 = arith.constant 0 : i32
    return %arg0, %c0_i32 : i32, i32
  }
  func.func @transform_5(%arg0: i32) -> (i32, i32) {
    %c0_i32 = arith.constant 0 : i32
    %c0_i32_0 = arith.constant 0 : i32
    return %arg0, %c0_i32 : i32, i32
  }
  func.func @transform_6(%arg0: i32) -> (i32, i32) {
    %c0_i32 = arith.constant 0 : i32
    %c0_i32_0 = arith.constant 0 : i32
    return %arg0, %c0_i32 : i32, i32
  }
  func.func @transform_7(%arg0: i32) -> (i32, i32) {
    %c0_i32 = arith.constant 0 : i32
    %c0_i32_0 = arith.constant 0 : i32
    return %arg0, %c0_i32 : i32, i32
  }
}

</mosaic_0001>

<bundles_post_ra>
// kernel: tpu_custom_call.1
= control target key start
LH: loop header
LB: loop body
LE: loop exit
PB: predicated region body
PF: predicated region fallthrough
CT: control target
= control target key end

     0   :  { %v1167_v1 = vmov 0   ;;  %v1168_v2 = vmov 0.0   ;;  %s1902_s0 = inlined_call_operand.vmem [shape: f32[8,256], index: 0, kind: input, shape index: {}]   ;;  %s1903_s1 = inlined_call_operand.vmem [shape: f32[256,8], index: 1, kind: input, shape index: {}]   ;;  %s1904_s2 = inlined_call_operand.vmem [shape: f32[256,1], index: 2, kind: input, shape index: {}]   ;;  %s1905_s3 = inlined_call_operand.vmem [shape: f32[8,256], index: 3, kind: input, shape index: {}]   ;;  %s1906_s4 = inlined_call_operand.vmem [shape: f32[8,1], index: 4, kind: input, shape index: {}]   ;;  %s1907_s5 = inlined_call_operand.vmem [shape: f32[8,1], index: 5, kind: input, shape index: {}]   ;;  %s1908_s6 = inlined_call_operand.vmem [shape: f32[8,1], index: 6, kind: input, shape index: {}]   ;;  %s1909_s7 = inlined_call_operand.hbm [shape: f32[8,256], index: 7, kind: output, shape index: {}]  }
   0x1   :  { %v93_v0 = vld [vmem:[%s1906_s4] sm:$0xff]  ;;  %1013 = vset.pattern.permute.xlu0 %v1167_v1  ;;  %426 = vmatprep.mubr.f32.mxu0 %v1168_v2  ;;  %v76_v3 = vld [vmem:[%s1904_s2 + $0x78] sm:$0xff] }
   0x2   :  { %100 = vperm.xlu0 %1013, %v93_v0   ;;  %1014 = vset.pattern.permute.xlu1 %v1167_v1  ;;  %v73_v4 = vld [vmem:[%s1904_s2 + $0x60] sm:$0xff] }
   0x6   :  { %182 = vperm.xlu0 %1013, %v76_v3  }
   0x7   :  { %12 = vsyncpa [#allocation3], 0  ;;  %v71_v5 = vld [vmem:[%s1904_s2 + $0x50] sm:$0xff]  ;;  %v69_v6 = vld [vmem:[%s1904_s2 + $0x40] sm:$0xff]  ;;  %vm265_vm0 = vcmask 64512   ;;  %s1169_s13 = smov [#allocation2]  }
   0x8   :  { %v67_v7 = vld [vmem:[%s1904_s2 + $0x30] sm:$0xff]  ;;  %v65_v8 = vld [vmem:[%s1904_s2 + $0x20] sm:$0xff]  ;;  %v74_v16 = vld [vmem:[%s1904_s2 + $0x68] sm:$0xff]  ;;  %s970_s14 = sshll.u32 %s1169_s13, 4  ;;  %s971_s14 = int_to_ptr.vmem [resolvable:$true] %s970_s14 }
   0x9   :  { %v63_v9 = vld [vmem:[%s1904_s2 + $0x10] sm:$0xff]  ;;  %v61_v10 = vld [vmem:[%s1904_s2] sm:$0xff]  ;;  %v72_v18 = vld [vmem:[%s1904_s2 + $0x58] sm:$0xff]  ;;  %p1150_p1 = scmp.lt.s32.totalorder %s971_s14, %s971_s14 }
   0xa   :  { %167 = vperm.xlu0 %1013, %v73_v4   ;;  %v91_v11 = vld [vmem:[%s1904_s2 + $0xf0] sm:$0xff]  ;;  %v89_v12 = vld [vmem:[%s1904_s2 + $0xe0] sm:$0xff]  ;;  %v70_v20 = vld [vmem:[%s1904_s2 + $0x48] sm:$0xff] }
   0xb   :  { %v87_v13 = vld [vmem:[%s1904_s2 + $0xd0] sm:$0xff]  ;;  %v85_v15 = vld [vmem:[%s1904_s2 + $0xc0] sm:$0xff]  ;;  %v68_v22 = vld [vmem:[%s1904_s2 + $0x38] sm:$0xff] }
   0xc   :  { %v75_v14 = vld [vmem:[%s1904_s2 + $0x70] sm:$0xff]  ;;  %v81_v19 = vld [vmem:[%s1904_s2 + $0xa0] sm:$0xff]  ;;  %v66_v24 = vld [vmem:[%s1904_s2 + $0x28] sm:$0xff] }
   0xd   :  { %177 = vperm.xlu1 %1014, %v75_v14   ;;  %v83_v17 = vld [vmem:[%s1904_s2 + $0xb0] sm:$0xff]  ;;  %v77_v23 = vld [vmem:[%s1904_s2 + $0x80] sm:$0xff]  ;;  %v64_v26 = vld [vmem:[%s1904_s2 + $0x18] sm:$0xff] }
   0xe   :  { %157 = vperm.xlu0 %1013, %v71_v5   ;;  %v79_v21 = vld [vmem:[%s1904_s2 + $0x90] sm:$0xff]  ;;  %v95_v25 = vld [vmem:[%s1908_s6] sm:$0xff]  ;;  %v62_v27 = vld [vmem:[%s1904_s2 + $0x8] sm:$0xff] }
   0xf   :  { %v92_v28 = vld [vmem:[%s1904_s2 + $0xf8] sm:$0xff]  ;;  %v90_v29 = vld [vmem:[%s1904_s2 + $0xe8] sm:$0xff]  ;;  %v96_v33 = vld [vmem:[%s1902_s0] sm:$0xff] }
  0x10   :  { %v88_v30 = vld [vmem:[%s1904_s2 + $0xd8] sm:$0xff]  ;;  %v86_v31 = vld [vmem:[%s1904_s2 + $0xc8] sm:$0xff]  ;;  %v27_v38 = vld [vmem:[%s1903_s1] sm:$0xff] }
  0x11   :  { %172 = vperm.xlu1 %1014, %v74_v16   ;;  %v97_v32 = vld [vmem:[%s1902_s0 + $0x8] sm:$0xff]  ;;  %v84_v37 = vld [vmem:[%s1904_s2 + $0xb8] sm:$0xff]  ;;  %v29_v42 = vld [vmem:[%s1903_s1 + $0x10] sm:$0xff] }
  0x12   :  { %147 = vperm.xlu0 %1013, %v69_v6   ;;  %v82_v39 = vld [vmem:[%s1904_s2 + $0xa8] sm:$0xff]  ;;  %v80_v41 = vld [vmem:[%s1904_s2 + $0x98] sm:$0xff]  ;;  %v94_v45 = vld [vmem:[%s1907_s5] sm:$0xff] }
  0x13   :  { %v28_v40 = vld [vmem:[%s1903_s1 + $0x8] sm:$0xff]  ;;  %v30_v44 = vld [vmem:[%s1903_s1 + $0x18] sm:$0xff]  ;;  %v31_v46 = vld [vmem:[%s1903_s1 + $0x20] sm:$0xff] }
  0x14   :  { %v78_v43 = vld [vmem:[%s1904_s2 + $0x88] sm:$0xff]  ;;  %v33_v48 = vld [vmem:[%s1903_s1 + $0x30] sm:$0xff]  ;;  %v34_v49 = vld [vmem:[%s1903_s1 + $0x38] sm:$0xff] }
  0x15   :  { %162 = vperm.xlu1 %1014, %v72_v18   ;;  %v32_v47 = vld [vmem:[%s1903_s1 + $0x28] sm:$0xff]  ;;  %v35_v50 = vld [vmem:[%s1903_s1 + $0x40] sm:$0xff]  ;;  %v37_v52 = vld [vmem:[%s1903_s1 + $0x50] sm:$0xff] }
  0x16   :  { %137 = vperm.xlu0 %1013, %v67_v7   ;;  %v36_v51 = vld [vmem:[%s1903_s1 + $0x48] sm:$0xff]  ;;  %v38_v53 = vld [vmem:[%s1903_s1 + $0x58] sm:$0xff]  ;;  %v39_v54 = vld [vmem:[%s1903_s1 + $0x60] sm:$0xff] }
  0x17   :  { %v40_v55 = vld [vmem:[%s1903_s1 + $0x68] sm:$0xff]  ;;  %v41_v56 = vld [vmem:[%s1903_s1 + $0x70] sm:$0xff]  ;;  %v42_v57 = vld [vmem:[%s1903_s1 + $0x78] sm:$0xff] }
  0x18   :  { %v43_v58 = vld [vmem:[%s1903_s1 + $0x80] sm:$0xff]  ;;  %v44_v59 = vld [vmem:[%s1903_s1 + $0x88] sm:$0xff]  ;;  %v45_v60 = vld [vmem:[%s1903_s1 + $0x90] sm:$0xff] }
  0x19   :  { %152 = vperm.xlu1 %1014, %v70_v20   ;;  %v46_v61 = vld [vmem:[%s1903_s1 + $0x98] sm:$0xff]  ;;  %v47_v62 = vld [vmem:[%s1903_s1 + $0xa0] sm:$0xff]  ;;  %v48_v63 = vld [vmem:[%s1903_s1 + $0xa8] sm:$0xff] }
  0x1a   :  { %127 = vperm.xlu0 %1013, %v65_v8   ;;  %v49_v0 = vld [vmem:[%s1903_s1 + $0xb0] sm:$0xff]  ;;  %v50_v1 = vld [vmem:[%s1903_s1 + $0xb8] sm:$0xff]  ;;  %v51_v3 = vld [vmem:[%s1903_s1 + $0xc0] sm:$0xff] }
  0x1b   :  { %v52_v4 = vld [vmem:[%s1903_s1 + $0xc8] sm:$0xff]  ;;  %v53_v5 = vld [vmem:[%s1903_s1 + $0xd0] sm:$0xff]  ;;  %v54_v6 = vld [vmem:[%s1903_s1 + $0xd8] sm:$0xff] }
  0x1c   :  { %v55_v7 = vld [vmem:[%s1903_s1 + $0xe0] sm:$0xff]  ;;  %v56_v8 = vld [vmem:[%s1903_s1 + $0xe8] sm:$0xff] }
  0x1d   :  { %142 = vperm.xlu1 %1014, %v68_v22  }
  0x1e   :  { %117 = vperm.xlu0 %1013, %v63_v9   ;;  %v57_v9 = vld [vmem:[%s1903_s1 + $0xf0] sm:$0xff] }
  0x21   :  { %132 = vperm.xlu1 %1014, %v66_v24  }
  0x22   :  { %107 = vperm.xlu0 %1013, %v61_v10   ;;  %v58_v10 = vld [vmem:[%s1903_s1 + $0xf8] sm:$0xff] }
  0x25   :  { %122 = vperm.xlu1 %1014, %v64_v26  }
  0x26   :  { %257 = vperm.xlu0 %1013, %v91_v11  }
  0x29   :  { %112 = vperm.xlu1 %1014, %v62_v27  }
  0x2a   :  { %247 = vperm.xlu0 %1013, %v89_v12  }
  0x2d   :  { %262 = vperm.xlu1 %1014, %v92_v28  }
  0x2e   :  { %237 = vperm.xlu0 %1013, %v87_v13  }
  0x31   :  { %252 = vperm.xlu1 %1014, %v90_v29  }
  0x32   :  { %227 = vperm.xlu0 %1013, %v85_v15  }
  0x35   :  { %242 = vperm.xlu1 %1014, %v88_v30  }
  0x36   :  { %217 = vperm.xlu0 %1013, %v83_v17  }
  0x39   :  { %232 = vperm.xlu1 %1014, %v86_v31  }
  0x3a   :  { %207 = vperm.xlu0 %1013, %v81_v19  }
  0x3d   :  { %222 = vperm.xlu1 %1014, %v84_v37  }
  0x3e   :  { %197 = vperm.xlu0 %1013, %v79_v21  }
  0x41   :  { %212 = vperm.xlu1 %1014, %v82_v39  }
  0x42   :  { %187 = vperm.xlu0 %1013, %v77_v23  }
  0x45   :  { %202 = vperm.xlu1 %1014, %v80_v41  }
  0x46   :  { %957 = vperm.xlu0 %1013, %v95_v25  }
  0x49   :  { %192 = vperm.xlu1 %1014, %v78_v43  }
  0x4d   :  { %948 = vperm.xlu1 %1014, %v94_v45   ;;  %v60_v45 = vld [vmem:[%s1905_s3 + $0x8] sm:$0xff] }
  0x4e   :  { %939 = vmatprep.mubr.f32.mxu1 %v60_v45 }
  0x7d   :  { %v101_v34 = vpop.permute.xlu0 %100 }
  0x7e   :  { %v104_v35 = vmul.f32 %v101_v34, %v97_v32  ;;  %v103_v36 = vmul.f32 %v101_v34, %v96_v33 }
  0x80   :  { %392 = vmatprep.subr.mxu0 %v104_v35 }
  0x81   :  { %393 = vmatpush1.msra.mxu0 %v103_v36  ;;  %v183_v26 = vpop.permute.xlu0 %182 }
  0x82   :  { %978 = vmatmul.mubr.msk.f32.vlgmr.msra.gmra.mxu0 %vm265_vm0, %v27_v38 }
  0x83   :  { %432 = vmatprep.mubr.f32.mxu0 %v1168_v2 }
  0x85   :  { %v168_v31 = vpop.permute.xlu0 %167 }
  0x86   :  { %979 = vmatmul.mubr.msk.f32.gmra.mxu0 %vm265_vm0, %v28_v40 }
  0x87   :  { %438 = vmatprep.mubr.f32.mxu0 %v1168_v2 }
  0x88   :  { %v178_v27 = vpop.permute.xlu1 %177 }
  0x89   :  { %v158_v36 = vpop.permute.xlu0 %157 }
  0x8a   :  { %980 = vmatmul.mubr.msk.f32.gmra.mxu0 %vm265_vm0, %v29_v42 }
  0x8b   :  { %444 = vmatprep.mubr.f32.mxu0 %v1168_v2 }
  0x8c   :  { %v173_v32 = vpop.permute.xlu1 %172 }
  0x8d   :  { %v148_v41 = vpop.permute.xlu0 %147 }
  0x8e   :  { %981 = vmatmul.mubr.msk.f32.gmra.mxu0 %vm265_vm0, %v30_v44 }
  0x8f   :  { %450 = vmatprep.mubr.f32.mxu0 %v1168_v2 }
  0x90   :  { %v163_v37 = vpop.permute.xlu1 %162 }
  0x92   :  { %982 = vmatmul.mubr.msk.f32.gmra.mxu0 %vm265_vm0, %v31_v46 }
  0x93   :  { %456 = vmatprep.mubr.f32.mxu0 %v1168_v2 }
  0x94   :  { %v153_v42 = vpop.permute.xlu1 %152 }
  0x96   :  { %983 = vmatmul.mubr.msk.f32.gmra.mxu0 %vm265_vm0, %v32_v47  ;;  %v138_v47 = vpop.permute.xlu0 %137 }
  0x97   :  { %462 = vmatprep.mubr.f32.mxu0 %v1168_v2 }
  0x9a   :  { %984 = vmatmul.mubr.msk.f32.gmra.mxu0 %vm265_vm0, %v33_v48  ;;  %v143_v48 = vpop.permute.xlu1 %142 }
  0x9b   :  { %468 = vmatprep.mubr.f32.mxu0 %v1168_v2 }
  0x9e   :  { %985 = vmatmul.mubr.msk.f32.gmra.mxu0 %vm265_vm0, %v34_v49 }
  0x9f   :  { %474 = vmatprep.mubr.f32.mxu0 %v1168_v2 }
  0xa2   :  { %986 = vmatmul.mubr.msk.f32.gmra.mxu0 %vm265_vm0, %v35_v50 }
  0xa3   :  { %480 = vmatprep.mubr.f32.mxu0 %v1168_v2 }
  0xa6   :  { %987 = vmatmul.mubr.msk.f32.gmra.mxu0 %vm265_vm0, %v36_v51 }
  0xa7   :  { %486 = vmatprep.mubr.f32.mxu0 %v1168_v2 }
  0xaa   :  { %988 = vmatmul.mubr.msk.f32.gmra.mxu0 %vm265_vm0, %v37_v52 }
  0xab   :  { %492 = vmatprep.mubr.f32.mxu0 %v1168_v2 }
  0xae   :  { %989 = vmatmul.mubr.msk.f32.gmra.mxu0 %vm265_vm0, %v38_v53 }
  0xaf   :  { %498 = vmatprep.mubr.f32.mxu0 %v1168_v2 }
  0xb2   :  { %990 = vmatmul.mubr.msk.f32.gmra.mxu0 %vm265_vm0, %v39_v54 }
  0xb3   :  { %504 = vmatprep.mubr.f32.mxu0 %v1168_v2 }
  0xb6   :  { %991 = vmatmul.mubr.msk.f32.gmra.mxu0 %vm265_vm0, %v40_v55 }
  0xb7   :  { %510 = vmatprep.mubr.f32.mxu0 %v1168_v2 }
  0xba   :  { %992 = vmatmul.mubr.msk.f32.gmra.mxu0 %vm265_vm0, %v41_v56 }
  0xbb   :  { %516 = vmatprep.mubr.f32.mxu0 %v1168_v2 }
  0xbe   :  { %993 = vmatmul.mubr.msk.f32.gmra.mxu0 %vm265_vm0, %v42_v57  ;;  %v1520_v57 = vpop.permute.xlu0 %127 }
  0xbf   :  { %522 = vmatprep.mubr.f32.mxu0 %v1168_v2 }
  0xc2   :  { %994 = vmatmul.mubr.msk.f32.gmra.mxu0 %vm265_vm0, %v43_v58 }
  0xc3   :  { %528 = vmatprep.mubr.f32.mxu0 %v1168_v2 }
  0xc6   :  { %995 = vmatmul.mubr.msk.f32.gmra.mxu0 %vm265_vm0, %v44_v59 }
  0xc7   :  { %534 = vmatprep.mubr.f32.mxu0 %v1168_v2 }
  0xca   :  { %996 = vmatmul.mubr.msk.f32.gmra.mxu0 %vm265_vm0, %v45_v60 }
  0xcb   :  { %540 = vmatprep.mubr.f32.mxu0 %v1168_v2 }
  0xce   :  { %997 = vmatmul.mubr.msk.f32.gmra.mxu0 %vm265_vm0, %v46_v61  ;;  %v133_v61 = vpop.permute.xlu1 %132 }
  0xcf   :  { %546 = vmatprep.mubr.f32.mxu0 %v1168_v2 }
  0xd2   :  { %998 = vmatmul.mubr.msk.f32.gmra.mxu0 %vm265_vm0, %v47_v62 }
  0xd3   :  { %552 = vmatprep.mubr.f32.mxu0 %v1168_v2 }
  0xd6   :  { %999 = vmatmul.mubr.msk.f32.gmra.mxu0 %vm265_vm0, %v48_v63 }
  0xd7   :  { %558 = vmatprep.mubr.f32.mxu0 %v1168_v2 }
  0xda   :  { %1000 = vmatmul.mubr.msk.f32.gmra.mxu0 %vm265_vm0, %v49_v0 }
  0xdb   :  { %564 = vmatprep.mubr.f32.mxu0 %v1168_v2 }
  0xde   :  { %1001 = vmatmul.mubr.msk.f32.gmra.mxu0 %vm265_vm0, %v50_v1 }
  0xdf   :  { %570 = vmatprep.mubr.f32.mxu0 %v1168_v2 }
  0xe2   :  { %1002 = vmatmul.mubr.msk.f32.gmra.mxu0 %vm265_vm0, %v51_v3 }
  0xe3   :  { %576 = vmatprep.mubr.f32.mxu0 %v1168_v2 }
  0xe6   :  { %1003 = vmatmul.mubr.msk.f32.gmra.mxu0 %vm265_vm0, %v52_v4 }
  0xe7   :  { %582 = vmatprep.mubr.f32.mxu0 %v1168_v2 }
  0xea   :  { %1004 = vmatmul.mubr.msk.f32.gmra.mxu0 %vm265_vm0, %v53_v5 }
  0xeb   :  { %588 = vmatprep.mubr.f32.mxu0 %v1168_v2 }
  0xee   :  { %1005 = vmatmul.mubr.msk.f32.gmra.mxu0 %vm265_vm0, %v54_v6 }
  0xef   :  { %594 = vmatprep.mubr.f32.mxu0 %v1168_v2 }
  0xf2   :  { %1006 = vmatmul.mubr.msk.f32.gmra.mxu0 %vm265_vm0, %v55_v7 }
  0xf3   :  { %600 = vmatprep.mubr.f32.mxu0 %v1168_v2 }
  0xf6   :  { %1007 = vmatmul.mubr.msk.f32.gmra.mxu0 %vm265_vm0, %v56_v8 }
  0xf7   :  { %606 = vmatprep.mubr.f32.mxu0 %v1168_v2 }
  0xfa   :  { %1008 = vmatmul.mubr.msk.f32.gmra.mxu0 %vm265_vm0, %v57_v9 }
  0xfb   :  { %612 = vmatprep.mubr.f32.mxu0 %v1168_v2 }
  0xfe   :  { %1009 = vmatmul.mubr.msk.f32.gmra.mxu0 %vm265_vm0, %v58_v10 }
 0x142   :  { %v1481_v11 = vpop.f32.mrf.mxu0 }
 0x144   :  { %v1483_v12 = vpop.f32.mrf.mxu0 }
 0x146   :  { %v1485_v13 = vpop.f32.mrf.mxu0 }
 0x148   :  { %v1487_v14 = vpop.f32.mrf.mxu0 }
 0x14a   :  { %v1489_v15 = vpop.f32.mrf.mxu0 }
 0x14c   :  { %v1491_v16 = vpop.f32.mrf.mxu0 }
 0x14e   :  { %v1493_v17 = vpop.f32.mrf.mxu0 }
 0x150   :  { %v1495_v2 = vpop.f32.mrf.mxu0 }
 0x152   :  { %v1497_v18 = vpop.f32.mrf.mxu0 }
 0x154   :  { %v1499_v19 = vpop.f32.mrf.mxu0 }
 0x156   :  { %v1501_v20 = vpop.f32.mrf.mxu0 }
 0x158   :  { %v1503_v21 = vpop.f32.mrf.mxu0 }
 0x15a   :  { %v1505_v22 = vpop.f32.mrf.mxu0 }
 0x15c   :  { %v1507_v23 = vpop.f32.mrf.mxu0 }
 0x15e   :  { %v1509_v24 = vpop.f32.mrf.mxu0 }
 0x160   :  { %v1511_v25 = vpop.f32.mrf.mxu0 }
 0x162   :  { %v1513_v28 = vpop.f32.mrf.mxu0 }
 0x164   :  { %v478_v29 = vpop.f32.mrf.mxu0 }
 0x166   :  { %v482_v30 = vpop.f32.mrf.mxu0 }
 0x168   :  { %v484_v33 = vpop.f32.mrf.mxu0 }
 0x16a   :  { %v488_v34 = vpop.f32.mrf.mxu0 }
 0x16c   :  { %v490_v35 = vpop.f32.mrf.mxu0 }
 0x16d   :  { %v491_v8 = vadd.f32 %v490_v35, %v158_v36  ;;  %v123_v35 = vpop.permute.xlu1 %122 }
 0x16e   :  { %v494_v38 = vpop.f32.mrf.mxu0 }
 0x16f   :  { %v495_v5 = vadd.f32 %v494_v38, %v163_v37 }
 0x170   :  { %v496_v39 = vpop.f32.mrf.mxu0 }
 0x171   :  { %v497_v1 = vadd.f32 %v496_v39, %v163_v37  ;;  %v485_v37 = vadd.f32 %v484_v33, %v153_v42  ;;  %v483_v39 = vadd.f32 %v482_v30, %v153_v42  ;;  %v473_v30 = vadd.f32 %v1511_v25, %v143_v48  ;;  %v113_v25 = vpop.permute.xlu1 %112 }
 0x172   :  { %v500_v40 = vpop.f32.mrf.mxu0 }
 0x173   :  { %v501_v62 = vadd.f32 %v500_v40, %v168_v31  ;;  %v1546_v38 = vmul.f32 0.5, %v497_v1  ;;  %v1549_v40 = vmul.f32 0.5, %v495_v5  ;;  %v1564_v42 = vmul.f32 0.5, %v485_v37 }
 0x174   :  { %v502_v43 = vpop.f32.mrf.mxu0 }
 0x175   :  { %v503_v58 = vadd.f32 %v502_v43, %v168_v31  ;;  %v1539_v31 = vmul.f32 0.5, %v501_v62  ;;  %v1554_v43 = vmul.f32 0.5, %v491_v8  ;;  %v447_v8 = vadd.f32 %v1493_v17, %v123_v35 }
 0x176   :  { %v506_v44 = vpop.f32.mrf.mxu0 }
 0x177   :  { %v507_v55 = vadd.f32 %v506_v44, %v173_v32  ;;  %v1534_v9 = vmul.f32 0.5, %v503_v58  ;;  %v477_v44 = vadd.f32 %v1513_v28, %v148_v41 }
 0x178   :  { %v508_v46 = vpop.f32.mrf.mxu0 }
 0x179   :  { %v509_v49 = vadd.f32 %v508_v46, %v173_v32  ;;  %v1529_v6 = vmul.f32 0.5, %v507_v55  ;;  %v1544_v32 = vpop.permute.xlu0 %117  ;;  %v1568_v46 = vmul.f32 0.5, %v483_v39  ;;  %v1587_v55 = vmul.f32 0.5, %v473_v30 }
 0x17a   :  { %v512_v50 = vpop.f32.mrf.mxu0 }
 0x17b   :  { %v513_v51 = vadd.f32 %v512_v50, %v178_v27  ;;  %v1518_v53 = vmul.f32 0.5, %v509_v49 }
 0x17c   :  { %v514_v52 = vpop.f32.mrf.mxu0 }
 0x17d   :  { %v515_v54 = vadd.f32 %v514_v52, %v178_v27  ;;  %v1524_v63 = vmul.f32 0.5, %v513_v51  ;;  %1015 = vtanh.f32 %v1518_v53  ;;  %v489_v27 = vadd.f32 %v488_v34, %v158_v36  ;;  %v108_v28 = vpop.permute.xlu0 %107 }
 0x17e   :  { %v518_v56 = vpop.f32.mrf.mxu0  ;;  %v479_v36 = vadd.f32 %v478_v29, %v148_v41  ;;  %v471_v29 = vadd.f32 %v1509_v24, %v143_v48  ;;  %v467_v41 = vadd.f32 %v1507_v23, %v138_v47  ;;  %v465_v51 = vadd.f32 %v1505_v22, %v138_v47 }
 0x17f   :  { %v1522_v59 = vmul.f32 0.5, %v515_v54  ;;  %v519_v60 = vadd.f32 %v518_v56, %v183_v26  ;;  %v1558_v33 = vmul.f32 0.5, %v489_v27  ;;  %v1578_v52 = vmul.f32 0.5, %v477_v44 }
 0x180   :  { %v520_v0 = vpop.f32.mrf.mxu0  ;;  %v1574_v50 = vmul.f32 0.5, %v479_v36  ;;  %v1584_v48 = vadd.f32 %v1481_v11, %v108_v28  ;;  %v461_v54 = vadd.f32 %v1503_v21, %v133_v61  ;;  %v1591_v56 = vadd.f32 %v1483_v12, %v108_v28 }
 0x181   :  { %v1527_v3 = vmul.f32 0.5, %v519_v60  ;;  %v521_v4 = vadd.f32 %v520_v0, %v183_v26  ;;  %1017 = vtanh.f32 %v1522_v59  ;;  %v459_v22 = vadd.f32 %v1501_v20, %v133_v61 }
 0x182   :  { %v1532_v7 = vpop.f32.mrf.mxu0  ;;  %v1594_v47 = vmul.f32 0.5, %v471_v29  ;;  %v435_v60 = vadd.f32 %v1485_v13, %v113_v25  ;;  %v455_v21 = vadd.f32 %v1499_v19, %v1520_v57  ;;  %v1602_v62 = vmul.f32 0.5, %v467_v41 }
 0x183   :  { %1019 = vtanh.f32 %v1527_v3  ;;  %v1537_v10 = vmul.f32 0.5, %v521_v4  ;;  %v437_v0 = vadd.f32 %v1487_v14, %v113_v25  ;;  %v453_v20 = vadd.f32 %v1497_v18, %v1520_v57 }
 0x184   :  { %1021 = vtanh.f32 %v1524_v63  ;;  %v1542_v26 = vpop.f32.mrf.mxu0  ;;  %v1608_v61 = vmul.f32 0.5, %v465_v51  ;;  %v443_v19 = vadd.f32 %v1491_v16, %v1544_v32  ;;  %v449_v4 = vadd.f32 %v1495_v2, %v123_v35 }
 0x185   :  { %1023 = vtanh.f32 %v1537_v10  ;;  %v1616_v5 = vmul.f32 0.5, %v461_v54  ;;  %v1620_v18 = vmul.f32 0.5, %v459_v22  ;;  %v1625_v39 = vmul.f32 0.5, %v455_v21 }
 0x186   :  { %1025 = vtanh.f32 %v1529_v6  ;;  %v1552_v34 = vpop.f32.mrf.mxu0  ;;  %v441_v44 = vadd.f32 %v1489_v15, %v1544_v32  ;;  %v1630_v30 = vmul.f32 0.5, %v453_v20  ;;  %v1635_v28 = vmul.f32 0.5, %v449_v4 }
 0x187   :  { %1027 = vtanh.f32 %v1534_v9  ;;  %v1639_v54 = vmul.f32 0.5, %v447_v8  ;;  %v1645_v21 = vmul.f32 0.5, %v443_v19  ;;  %v1655_v19 = vmul.f32 0.5, %v437_v0 }
 0x188   :  { %1029 = vtanh.f32 %v1539_v31  ;;  %v1561_v45 = vpop.f32.mrf.mxu0  ;;  %v1649_v20 = vmul.f32 0.5, %v441_v44  ;;  %v1666_v0 = vmul.f32 0.5, %v1591_v56 }
 0x189   :  { %1031 = vtanh.f32 %v1546_v38 }
 0x18a   :  { %1033 = vtanh.f32 %v1549_v40  ;;  %v1571_v49 = vpop.f32.mrf.mxu0  ;;  %v1016_v23 = vpop.eup %1015 }
 0x18b   :  { %1035 = vtanh.f32 %v1554_v43  ;;  %v774_v41 = vadd.f32 1.0, %v1016_v23 }
 0x18c   :  { %1037 = vtanh.f32 %v1558_v33  ;;  %v1581_v24 = vpop.f32.mrf.mxu0 }
 0x18d   :  { %1039 = vtanh.f32 %v1564_v42 }
 0x18e   :  { %1041 = vtanh.f32 %v1568_v46  ;;  %v1597_v58 = vpop.f32.mrf.mxu0  ;;  %v1018_v11 = vpop.eup %1017 }
 0x18f   :  { %1043 = vtanh.f32 %v1574_v50  ;;  %v776_v16 = vadd.f32 1.0, %v1018_v11 }
 0x190   :  { %v1020_v12 = vpop.eup %1019  ;;  %1045 = vtanh.f32 %v1578_v52  ;;  %v1611_v1 = vpop.f32.mrf.mxu0 }
 0x191   :  { %v1022_v13 = vpop.eup %1021  ;;  %1047 = vtanh.f32 %v1587_v55  ;;  %v777_v27 = vadd.f32 1.0, %v1020_v12  ;;  %v840_v23 = vmul.f32 %v776_v16, %v1522_v59  ;;  %v838_v59 = vmul.f32 %v774_v41, %v1518_v53 }
 0x192   :  { %v1024_v14 = vpop.eup %1023  ;;  %1049 = vtanh.f32 %v1594_v47  ;;  %v1623_v57 = vpop.f32.mrf.mxu0  ;;  %v775_v17 = vadd.f32 1.0, %v1022_v13 }
 0x193   :  { %v1026_v37 = vpop.eup %1025  ;;  %1051 = vtanh.f32 %v1602_v62  ;;  %v778_v2 = vadd.f32 1.0, %v1024_v14  ;;  %v841_v22 = vmul.f32 %v777_v27, %v1527_v3 }
 0x194   :  { %v1028_v36 = vpop.eup %1027  ;;  %1053 = vtanh.f32 %v1608_v61  ;;  %v1633_v35 = vpop.f32.mrf.mxu0  ;;  %v773_v15 = vadd.f32 1.0, %v1026_v37  ;;  %v839_v4 = vmul.f32 %v775_v17, %v1524_v63  ;;  %v1659_v37 = vmul.f32 0.5, %v435_v60 }
 0x195   :  { %v1030_v29 = vpop.eup %1029  ;;  %1055 = vtanh.f32 %v1616_v5  ;;  %v842_v25 = vmul.f32 %v778_v2, %v1537_v10  ;;  %v772_v12 = vadd.f32 1.0, %v1028_v36  ;;  %v1671_v17 = vmul.f32 0.5, %v1584_v48 }
 0x196   :  { %v1032_v51 = vpop.eup %1031  ;;  %1057 = vtanh.f32 %v1620_v18  ;;  %v1642_v32 = vpop.f32.mrf.mxu0  ;;  %v771_v13 = vadd.f32 1.0, %v1030_v29  ;;  %v837_v63 = vmul.f32 %v773_v15, %v1529_v6 }
 0x197   :  { %v1034_v11 = vpop.eup %1033  ;;  %1059 = vtanh.f32 %v1625_v39  ;;  %875 = vmatprep.subr.mxu1 %v842_v25  ;;  %v770_v8 = vadd.f32 1.0, %v1032_v51  ;;  %v836_v53 = vmul.f32 %v772_v12, %v1534_v9 }
 0x198   :  { %v1036_v10 = vpop.eup %1035  ;;  %1061 = vtanh.f32 %v1630_v30  ;;  %v1653_v14 = vpop.f32.mrf.mxu0  ;;  %876 = vmatpush1.msra.mxu1 %v841_v22  ;;  %v769_v16 = vadd.f32 1.0, %v1034_v11  ;;  %v835_v29 = vmul.f32 %v771_v13, %v1539_v31 }
 0x199   :  { %v1038_v3 = vpop.eup %1037  ;;  %1063 = vtanh.f32 %v1635_v28  ;;  %877 = vmatprep.subr.mxu1 %v840_v23  ;;  %v768_v44 = vadd.f32 1.0, %v1036_v10  ;;  %v834_v51 = vmul.f32 %v770_v8, %v1546_v38 }
 0x19a   :  { %v1040_v27 = vpop.eup %1039  ;;  %1065 = vtanh.f32 %v1639_v54  ;;  %v1663_v2 = vpop.f32.mrf.mxu0  ;;  %878 = vmatpush1.msra.mxu1 %v839_v4  ;;  %v767_v6 = vadd.f32 1.0, %v1038_v3  ;;  %v833_v15 = vmul.f32 %v769_v16, %v1549_v40 }
 0x19b   :  { %v1042_v36 = vpop.eup %1041  ;;  %1067 = vtanh.f32 %v1645_v21  ;;  %879 = vmatprep.subr.mxu1 %v838_v59  ;;  %v766_v25 = vadd.f32 1.0, %v1040_v27  ;;  %v832_v12 = vmul.f32 %v768_v44, %v1554_v43  ;;  %v1689_v4 = vpop.permute.xlu0 %257 }
 0x19c   :  { %v1044_v60 = vpop.eup %1043  ;;  %1069 = vtanh.f32 %v1649_v20  ;;  %v1675_v41 = vpop.f32.mrf.mxu0  ;;  %880 = vmatpush1.msra.mxu1 %v837_v63  ;;  %v765_v48 = vadd.f32 1.0, %v1042_v36  ;;  %v831_v10 = vmul.f32 %v767_v6, %v1558_v33 }
 0x19d   :  { %v1046_v56 = vpop.eup %1045  ;;  %1071 = vtanh.f32 %v1655_v19  ;;  %881 = vmatprep.subr.mxu1 %v836_v53  ;;  %v764_v11 = vadd.f32 1.0, %v1044_v60  ;;  %v830_v8 = vmul.f32 %v766_v25, %v1564_v42  ;;  %v1693_v16 = vpop.permute.xlu1 %262 }
 0x19e   :  { %v1048_v9 = vpop.eup %1047  ;;  %1073 = vtanh.f32 %v1659_v37  ;;  %v1681_v22 = vpop.f32.mrf.mxu0  ;;  %882 = vmatpush1.msra.mxu1 %v835_v29  ;;  %v763_v38 = vadd.f32 1.0, %v1046_v56  ;;  %v829_v43 = vmul.f32 %v765_v48, %v1568_v46 }
 0x19f   :  { %v1050_v31 = vpop.eup %1049  ;;  %1075 = vtanh.f32 %v1666_v0  ;;  %883 = vmatprep.subr.mxu1 %v834_v51  ;;  %v762_v3 = vadd.f32 1.0, %v1048_v9  ;;  %v828_v44 = vmul.f32 %v764_v11, %v1574_v50 }
 0x1a0   :  { %v1052_v23 = vpop.eup %1051  ;;  %1077 = vtanh.f32 %v1671_v17  ;;  %v1687_v13 = vpop.f32.mrf.mxu0  ;;  %884 = vmatpush1.msra.mxu1 %v833_v15  ;;  %v761_v27 = vadd.f32 1.0, %v1050_v31  ;;  %v827_v6 = vmul.f32 %v763_v38, %v1578_v52 }
 0x1a1   :  { %v1054_v40 = vpop.eup %1053  ;;  %885 = vmatprep.subr.mxu1 %v832_v12  ;;  %v760_v36 = vadd.f32 1.0, %v1052_v23  ;;  %v826_v46 = vmul.f32 %v762_v3, %v1587_v55  ;;  %v1705_v15 = vpop.permute.xlu0 %247 }
 0x1a2   :  { %v1056_v59 = vpop.eup %1055  ;;  %v1695_v63 = vpop.f32.mrf.mxu0  ;;  %886 = vmatpush1.msra.mxu1 %v831_v10  ;;  %v759_v60 = vadd.f32 1.0, %v1054_v40  ;;  %v825_v9 = vmul.f32 %v761_v27, %v1594_v47 }
 0x1a3   :  { %v1058_v33 = vpop.eup %1057  ;;  %887 = vmatprep.subr.mxu1 %v830_v8  ;;  %v758_v56 = vadd.f32 1.0, %v1056_v59  ;;  %v824_v52 = vmul.f32 %v760_v36, %v1602_v62  ;;  %v253_v55 = vpop.permute.xlu1 %252 }
 0x1a4   :  { %v1060_v53 = vpop.eup %1059  ;;  %v1699_v42 = vpop.f32.mrf.mxu0  ;;  %888 = vmatpush1.msra.mxu1 %v829_v43  ;;  %v757_v51 = vadd.f32 1.0, %v1058_v33  ;;  %v823_v23 = vmul.f32 %v759_v60, %v1608_v61 }
 0x1a5   :  { %v1062_v29 = vpop.eup %1061  ;;  %889 = vmatprep.subr.mxu1 %v828_v44  ;;  %v756_v31 = vadd.f32 1.0, %v1060_v53  ;;  %v822_v40 = vmul.f32 %v758_v56, %v1616_v5  ;;  %v238_v60 = vpop.permute.xlu0 %237 }
 0x1a6   :  { %v1064_v25 = vpop.eup %1063  ;;  %v1703_v48 = vpop.f32.mrf.mxu0  ;;  %890 = vmatpush1.msra.mxu1 %v827_v6  ;;  %v755_v12 = vadd.f32 1.0, %v1062_v29  ;;  %v821_v59 = vmul.f32 %v757_v51, %v1620_v18 }
 0x1a7   :  { %v1066_v50 = vpop.eup %1065  ;;  %891 = vmatprep.subr.mxu1 %v826_v46  ;;  %v754_v47 = vadd.f32 1.0, %v1064_v25  ;;  %v820_v61 = vmul.f32 %v756_v31, %v1625_v39  ;;  %v243_v46 = vpop.permute.xlu1 %242 }
 0x1a8   :  { %v1068_v11 = vpop.eup %1067  ;;  %v1709_v38 = vpop.f32.mrf.mxu0  ;;  %892 = vmatpush1.msra.mxu1 %v825_v9  ;;  %v753_v8 = vadd.f32 1.0, %v1066_v50  ;;  %v819_v44 = vmul.f32 %v755_v12, %v1630_v30 }
 0x1a9   :  { %v1070_v10 = vpop.eup %1069  ;;  %893 = vmatprep.subr.mxu1 %v824_v52  ;;  %v752_v43 = vadd.f32 1.0, %v1068_v11  ;;  %v818_v29 = vmul.f32 %v754_v47, %v1635_v28 }
 0x1aa   :  { %v1072_v3 = vpop.eup %1071  ;;  %v1713_v27 = vpop.f32.mrf.mxu0  ;;  %894 = vmatpush1.msra.mxu1 %v823_v23  ;;  %v751_v36 = vadd.f32 1.0, %v1070_v10  ;;  %v817_v56 = vmul.f32 %v753_v8, %v1639_v54 }
 0x1ab   :  { %v1074_v62 = vpop.eup %1073  ;;  %895 = vmatprep.subr.mxu1 %v822_v40  ;;  %v750_v6 = vadd.f32 1.0, %v1072_v3  ;;  %v816_v51 = vmul.f32 %v752_v43, %v1645_v21  ;;  %v228_v54 = vpop.permute.xlu0 %227 }
 0x1ac   :  { %v1076_v33 = vpop.eup %1075  ;;  %v586_v53 = vpop.f32.mrf.mxu0  ;;  %896 = vmatpush1.msra.mxu1 %v821_v59  ;;  %v749_v18 = vadd.f32 1.0, %v1074_v62  ;;  %v815_v30 = vmul.f32 %v751_v36, %v1649_v20 }
 0x1ad   :  { %v1078_v5 = vpop.eup %1077  ;;  %897 = vmatprep.subr.mxu1 %v820_v61  ;;  %v748_v39 = vadd.f32 1.0, %v1076_v33  ;;  %v814_v31 = vmul.f32 %v750_v6, %v1655_v19  ;;  %v233_v21 = vpop.permute.xlu1 %232 }
 0x1ae   :  { %v590_v25 = vpop.f32.mrf.mxu0  ;;  %898 = vmatpush1.msra.mxu1 %v819_v44  ;;  %v747_v9 = vadd.f32 1.0, %v1078_v5  ;;  %v813_v28 = vmul.f32 %v749_v18, %v1659_v37 }
 0x1af   :  { %899 = vmatprep.subr.mxu1 %v818_v29  ;;  %v812_v11 = vmul.f32 %v748_v39, %v1666_v0  ;;  %v218_v47 = vpop.permute.xlu0 %217 }
 0x1b0   :  { %v592_v50 = vpop.f32.mrf.mxu0  ;;  %900 = vmatpush1.msra.mxu1 %v817_v56  ;;  %v811_v12 = vmul.f32 %v747_v9, %v1671_v17  ;;  %v591_v56 = vadd.f32 %v590_v25, %v243_v46 }
 0x1b1   :  { %901 = vmatprep.subr.mxu1 %v816_v51  ;;  %v223_v40 = vpop.permute.xlu1 %222  ;;  %v593_v18 = vadd.f32 %v592_v50, %v243_v46  ;;  %v587_v51 = vadd.f32 %v586_v53, %v238_v60 }
 0x1b2   :  { %v596_v52 = vpop.f32.mrf.mxu0  ;;  %902 = vmatpush1.msra.mxu1 %v815_v30  ;;  %v585_v30 = vadd.f32 %v1713_v27, %v238_v60  ;;  %v575_v27 = vadd.f32 %v1699_v42, %v228_v54  ;;  %v563_v42 = vadd.f32 %v1675_v41, %v218_v47 }
 0x1b3   :  { %903 = vmatprep.subr.mxu1 %v814_v31  ;;  %v1729_v43 = vpop.permute.xlu0 %207  ;;  %v597_v5 = vadd.f32 %v596_v52, %v1705_v15  ;;  %v1755_v46 = vmul.f32 0.5, %v593_v18  ;;  %v579_v31 = vadd.f32 %v1703_v48, %v233_v21  ;;  %v1763_v60 = vmul.f32 0.5, %v587_v51 }
 0x1b4   :  { %v598_v23 = vpop.f32.mrf.mxu0  ;;  %904 = vmatpush1.msra.mxu1 %v813_v28  ;;  %v1759_v28 = vmul.f32 0.5, %v591_v56  ;;  %v1767_v52 = vmul.f32 0.5, %v585_v30  ;;  %v567_v48 = vadd.f32 %v1681_v22, %v223_v40 }
 0x1b5   :  { %905 = vmatprep.subr.mxu1 %v812_v11  ;;  %v599_v61 = vadd.f32 %v598_v23, %v1705_v15  ;;  %v213_v44 = vpop.permute.xlu1 %212  ;;  %v1751_v50 = vmul.f32 0.5, %v597_v5  ;;  %v569_v11 = vadd.f32 %v1687_v13, %v223_v40  ;;  %v1779_v23 = vmul.f32 0.5, %v575_v27 }
 0x1b6   :  { %v602_v20 = vpop.f32.mrf.mxu0  ;;  %906 = vmatpush1.msra.mxu1 %v811_v12  ;;  %v561_v13 = vadd.f32 %v1663_v2, %v218_v47  ;;  %v1797_v2 = vmul.f32 0.5, %v567_v48 }
 0x1b7   :  { %v603_v62 = vadd.f32 %v602_v20, %v253_v55  ;;  %v1745_v9 = vmul.f32 0.5, %v599_v61  ;;  %v198_v25 = vpop.permute.xlu0 %197 }
 0x1b8   :  { %v604_v10 = vpop.f32.mrf.mxu0 }
 0x1b9   :  { %v605_v19 = vadd.f32 %v604_v10, %v253_v55  ;;  %v1742_v39 = vmul.f32 0.5, %v603_v62  ;;  %v203_v53 = vpop.permute.xlu1 %202  ;;  %v557_v10 = vadd.f32 %v1653_v14, %v213_v44  ;;  %v551_v14 = vadd.f32 %v1633_v35, %v1729_v43 }
 0x1ba   :  { %v608_v3 = vpop.f32.mrf.mxu0 }
 0x1bb   :  { %v609_v37 = vadd.f32 %v608_v3, %v1689_v4  ;;  %v1726_v59 = vmul.f32 0.5, %v605_v19  ;;  %v1790_v19 = vmul.f32 0.5, %v569_v11  ;;  %v555_v3 = vadd.f32 %v1642_v32, %v213_v44 }
 0x1bc   :  { %v610_v8 = vpop.f32.mrf.mxu0  ;;  %v549_v32 = vadd.f32 %v1623_v57, %v1729_v43  ;;  %v1814_v35 = vmul.f32 0.5, %v557_v10  ;;  %v1821_v44 = vmul.f32 0.5, %v551_v14 }
 0x1bd   :  { %v611_v0 = vadd.f32 %v610_v8, %v1689_v4  ;;  %v1736_v6 = vmul.f32 0.5, %v609_v37  ;;  %1079 = vtanh.f32 %v1726_v59  ;;  %v1803_v37 = vmul.f32 0.5, %v563_v42 }
 0x1be   :  { %v614_v17 = vpop.f32.mrf.mxu0  ;;  %v1825_v18 = vmul.f32 0.5, %v549_v32 }
 0x1bf   :  { %v1732_v33 = vmul.f32 0.5, %v611_v0  ;;  %v615_v36 = vadd.f32 %v614_v17, %v1693_v16  ;;  %v1809_v0 = vmul.f32 0.5, %v561_v13  ;;  %v545_v17 = vadd.f32 %v1611_v1, %v203_v53 }
 0x1c0   :  { %v616_v29 = vpop.f32.mrf.mxu0 }
 0x1c1   :  { %v1739_v4 = vmul.f32 0.5, %v615_v36  ;;  %v617_v55 = vadd.f32 %v616_v29, %v1693_v16  ;;  %1081 = vtanh.f32 %v1732_v33  ;;  %v581_v16 = vadd.f32 %v1709_v38, %v233_v21 }
 0x1c2   :  { %v573_v38 = vadd.f32 %v1695_v63, %v228_v54  ;;  %v1775_v21 = vmul.f32 0.5, %v579_v31  ;;  %v188_v63 = vpop.permute.xlu0 %187  ;;  %v193_v54 = vpop.permute.xlu1 %192  ;;  %v543_v36 = vadd.f32 %v1597_v58, %v203_v53  ;;  %v537_v29 = vadd.f32 %v1571_v49, %v198_v25 }
 0x1c3   :  { %1083 = vtanh.f32 %v1739_v4  ;;  %v1748_v15 = vmul.f32 0.5, %v617_v55  ;;  %v1771_v12 = vmul.f32 0.5, %v581_v16  ;;  %v1787_v22 = vadd.f32 %v1532_v7, %v188_v63 }
 0x1c4   :  { %1085 = vtanh.f32 %v1736_v6  ;;  %v1783_v20 = vmul.f32 0.5, %v573_v38  ;;  %v1794_v40 = vadd.f32 %v1542_v26, %v188_v63  ;;  %v531_v7 = vadd.f32 %v1552_v34, %v193_v54 }
 0x1c5   :  { %1087 = vtanh.f32 %v1748_v15  ;;  %v533_v26 = vadd.f32 %v1561_v45, %v193_v54  ;;  %v539_v34 = vadd.f32 %v1581_v24, %v198_v25  ;;  %v1818_v45 = vmul.f32 0.5, %v555_v3 }
 0x1c6   :  { %1089 = vtanh.f32 %v1742_v39  ;;  %v1828_v56 = vmul.f32 0.5, %v545_v17  ;;  %v1832_v53 = vmul.f32 0.5, %v543_v36  ;;  %v1840_v42 = vmul.f32 0.5, %v537_v29 }
 0x1c7   :  { %1091 = vtanh.f32 %v1745_v9  ;;  %v1836_v27 = vmul.f32 0.5, %v539_v34  ;;  %v1853_v14 = vmul.f32 0.5, %v1794_v40 }
 0x1c8   :  { %1093 = vtanh.f32 %v1751_v50 }
 0x1c9   :  { %1095 = vtanh.f32 %v1755_v46 }
 0x1ca   :  { %1097 = vtanh.f32 %v1759_v28  ;;  %v1080_v41 = vpop.eup %1079 }
 0x1cb   :  { %1099 = vtanh.f32 %v1763_v60  ;;  %v806_v51 = vadd.f32 1.0, %v1080_v41  ;;  %v1848_v41 = vmul.f32 0.5, %v531_v7  ;;  %v1858_v7 = vmul.f32 0.5, %v1787_v22 }
 0x1cc   :  { %1101 = vtanh.f32 %v1767_v52 }
 0x1cd   :  { %1103 = vtanh.f32 %v1771_v12  ;;  %v870_v10 = vmul.f32 %v806_v51, %v1726_v59 }
 0x1ce   :  { %1105 = vtanh.f32 %v1775_v21  ;;  %v1082_v47 = vpop.eup %1081 }
 0x1cf   :  { %1107 = vtanh.f32 %v1779_v23  ;;  %v808_v24 = vadd.f32 1.0, %v1082_v47 }
 0x1d0   :  { %v1084_v8 = vpop.eup %1083  ;;  %1109 = vtanh.f32 %v1783_v20 }
 0x1d1   :  { %v1086_v62 = vpop.eup %1085  ;;  %1111 = vtanh.f32 %v1790_v19  ;;  %v809_v57 = vadd.f32 1.0, %v1084_v8  ;;  %v872_v11 = vmul.f32 %v808_v24, %v1732_v33 }
 0x1d2   :  { %v1088_v61 = vpop.eup %1087  ;;  %1113 = vtanh.f32 %v1797_v2  ;;  %v807_v58 = vadd.f32 1.0, %v1086_v62 }
 0x1d3   :  { %v1090_v43 = vpop.eup %1089  ;;  %1115 = vtanh.f32 %v1803_v37  ;;  %v810_v5 = vadd.f32 1.0, %v1088_v61  ;;  %v873_v49 = vmul.f32 %v809_v57, %v1739_v4  ;;  %v1844_v4 = vmul.f32 0.5, %v533_v26 }
 0x1d4   :  { %v1092_v1 = vpop.eup %1091  ;;  %1117 = vtanh.f32 %v1809_v0  ;;  %v805_v31 = vadd.f32 1.0, %v1090_v43  ;;  %v871_v63 = vmul.f32 %v807_v58, %v1736_v6 }
 0x1d5   :  { %v1094_v55 = vpop.eup %1093  ;;  %1119 = vtanh.f32 %v1814_v35  ;;  %v874_v30 = vmul.f32 %v810_v5, %v1748_v15  ;;  %v804_v38 = vadd.f32 1.0, %v1092_v1 }
 0x1d6   :  { %v1096_v16 = vpop.eup %1095  ;;  %1121 = vtanh.f32 %v1818_v45  ;;  %v803_v15 = vadd.f32 1.0, %v1094_v55  ;;  %v869_v47 = vmul.f32 %v805_v31, %v1742_v39 }
 0x1d7   :  { %v1098_v25 = vpop.eup %1097  ;;  %1123 = vtanh.f32 %v1821_v44  ;;  %907 = vmatprep.subr.mxu1 %v874_v30  ;;  %v802_v13 = vadd.f32 1.0, %v1096_v16  ;;  %v868_v26 = vmul.f32 %v804_v38, %v1745_v9 }
 0x1d8   :  { %v1100_v48 = vpop.eup %1099  ;;  %1125 = vtanh.f32 %v1825_v18  ;;  %908 = vmatpush2.msra.mxu1 %v873_v49  ;;  %v801_v3 = vadd.f32 1.0, %v1098_v25  ;;  %v867_v39 = vmul.f32 %v803_v15, %v1751_v50 }
 0x1d9   :  { %v1102_v54 = vpop.eup %1101  ;;  %1127 = vtanh.f32 %v1828_v56  ;;  %909 = vmatprep.subr.mxu1 %v872_v11  ;;  %v800_v8 = vadd.f32 1.0, %v1100_v48  ;;  %v866_v34 = vmul.f32 %v802_v13, %v1755_v46 }
 0x1da   :  { %v1104_v33 = vpop.eup %1103  ;;  %1129 = vtanh.f32 %v1832_v53  ;;  %910 = vmatpush2.msra.mxu1 %v871_v63  ;;  %v799_v32 = vadd.f32 1.0, %v1102_v54  ;;  %v865_v22 = vmul.f32 %v801_v3, %v1759_v28 }
 0x1db   :  { %v1106_v6 = vpop.eup %1105  ;;  %1131 = vtanh.f32 %v1836_v27  ;;  %911 = vmatprep.subr.mxu1 %v870_v10  ;;  %v798_v40 = vadd.f32 1.0, %v1104_v33  ;;  %v864_v50 = vmul.f32 %v800_v8, %v1763_v60 }
 0x1dc   :  { %v1108_v59 = vpop.eup %1107  ;;  %1133 = vtanh.f32 %v1840_v42  ;;  %912 = vmatpush2.msra.mxu1 %v869_v47  ;;  %v797_v9 = vadd.f32 1.0, %v1106_v6  ;;  %v863_v46 = vmul.f32 %v799_v32, %v1767_v52 }
 0x1dd   :  { %v1110_v62 = vpop.eup %1109  ;;  %1135 = vtanh.f32 %v1844_v4  ;;  %913 = vmatprep.subr.mxu1 %v868_v26  ;;  %v796_v36 = vadd.f32 1.0, %v1108_v59  ;;  %v862_v1 = vmul.f32 %v798_v40, %v1771_v12 }
 0x1de   :  { %v1112_v17 = vpop.eup %1111  ;;  %1137 = vtanh.f32 %v1848_v41  ;;  %914 = vmatpush2.msra.mxu1 %v867_v39  ;;  %v795_v43 = vadd.f32 1.0, %v1110_v62  ;;  %v861_v58 = vmul.f32 %v797_v9, %v1775_v21 }
 0x1df   :  { %v1114_v61 = vpop.eup %1113  ;;  %1139 = vtanh.f32 %v1853_v14  ;;  %915 = vmatprep.subr.mxu1 %v866_v34  ;;  %v794_v5 = vadd.f32 1.0, %v1112_v17  ;;  %v860_v51 = vmul.f32 %v796_v36, %v1779_v23 }
 0x1e0   :  { %v1116_v57 = vpop.eup %1115  ;;  %1141 = vtanh.f32 %v1858_v7  ;;  %916 = vmatpush2.msra.mxu1 %v865_v22  ;;  %v793_v29 = vadd.f32 1.0, %v1114_v61  ;;  %v859_v52 = vmul.f32 %v795_v43, %v1783_v20  ;;  %v958_v61 = vpop.permute.xlu0 %957 }
 0x1e1   :  { %v1118_v24 = vpop.eup %1117  ;;  %917 = vmatprep.subr.mxu1 %v864_v50  ;;  %v792_v60 = vadd.f32 1.0, %v1116_v57  ;;  %v858_v12 = vmul.f32 %v794_v5, %v1790_v19 }
 0x1e2   :  { %v1120_v28 = vpop.eup %1119  ;;  %918 = vmatpush2.msra.mxu1 %v863_v46  ;;  %v791_v16 = vadd.f32 1.0, %v1118_v24  ;;  %v857_v21 = vmul.f32 %v793_v29, %v1797_v2 }
 0x1e3   :  { %v1122_v55 = vpop.eup %1121  ;;  %919 = vmatprep.subr.mxu1 %v862_v1  ;;  %v790_v49 = vadd.f32 1.0, %v1120_v28  ;;  %v856_v23 = vmul.f32 %v792_v60, %v1803_v37 }
 0x1e4   :  { %v1124_v30 = vpop.eup %1123  ;;  %920 = vmatpush2.msra.mxu1 %v861_v58  ;;  %v789_v38 = vadd.f32 1.0, %v1122_v55  ;;  %v855_v20 = vmul.f32 %v791_v16, %v1809_v0 }
 0x1e5   :  { %v1126_v31 = vpop.eup %1125  ;;  %921 = vmatprep.subr.mxu1 %v860_v51  ;;  %v788_v48 = vadd.f32 1.0, %v1124_v30  ;;  %v854_v19 = vmul.f32 %v790_v49, %v1814_v35 }
 0x1e6   :  { %v1128_v25 = vpop.eup %1127  ;;  %922 = vmatpush2.msra.mxu1 %v859_v52  ;;  %v787_v63 = vadd.f32 1.0, %v1126_v31  ;;  %v853_v2 = vmul.f32 %v789_v38, %v1818_v45 }
 0x1e7   :  { %v1130_v11 = vpop.eup %1129  ;;  %923 = vmatprep.subr.mxu1 %v858_v12  ;;  %v786_v13 = vadd.f32 1.0, %v1128_v25  ;;  %v852_v37 = vmul.f32 %v788_v48, %v1821_v44 }
 0x1e8   :  { %v1132_v15 = vpop.eup %1131  ;;  %924 = vmatpush2.msra.mxu1 %v857_v21  ;;  %v785_v33 = vadd.f32 1.0, %v1130_v11  ;;  %v851_v0 = vmul.f32 %v787_v63, %v1825_v18 }
 0x1e9   :  { %v1134_v54 = vpop.eup %1133  ;;  %925 = vmatprep.subr.mxu1 %v856_v23  ;;  %v784_v47 = vadd.f32 1.0, %v1132_v15  ;;  %v850_v35 = vmul.f32 %v786_v13, %v1828_v56 }
 0x1ea   :  { %v1136_v10 = vpop.eup %1135  ;;  %926 = vmatpush2.msra.mxu1 %v855_v20  ;;  %v783_v8 = vadd.f32 1.0, %v1134_v54  ;;  %v849_v39 = vmul.f32 %v785_v33, %v1832_v53 }
 0x1eb   :  { %v1138_v3 = vpop.eup %1137  ;;  %927 = vmatprep.subr.mxu1 %v854_v19  ;;  %v782_v59 = vadd.f32 1.0, %v1136_v10  ;;  %v848_v62 = vmul.f32 %v784_v47, %v1836_v27  ;;  %v59_v27 = vld [vmem:[%s1905_s3] sm:$0xff]  ;;  %s1145_s3 = scalar_lea.vmem %s971_s14, 256 }
 0x1ec   :  { %v1140_v6 = vpop.eup %1139  ;;  %928 = vmatpush2.msra.mxu1 %v853_v2  ;;  %v781_v32 = vadd.f32 1.0, %v1138_v3  ;;  %v847_v40 = vmul.f32 %v783_v8, %v1840_v42  ;;  %v949_v42 = vpop.permute.xlu1 %948  ;;  %p1146_p0 = scmp.ne.s32.totalorder %s971_s14, %s1145_s3  ;;  %p1151_p2 = scmp.lt.s32.totalorder %s1145_s3, %s1145_s3 }
 0x1ed   :  { %v1142_v26 = vpop.eup %1141  ;;  %929 = vmatprep.subr.mxu1 %v852_v37  ;;  %v780_v45 = vadd.f32 1.0, %v1140_v6  ;;  %v846_v18 = vmul.f32 %v782_v59, %v1844_v4 }
 0x1ee   :  { %930 = vmatpush2.msra.mxu1 %v851_v0  ;;  %v779_v44 = vadd.f32 1.0, %v1142_v26  ;;  %v845_v34 = vmul.f32 %v781_v32, %v1848_v41  ;;  %v1143_v41 = vld [vmem:[%s1902_s0] sm:$0xff]  ;;  %p1152_p3 = por %p1151_p2, %p1150_p1 }
 0x1ef   :  { %931 = vmatprep.subr.mxu1 %v850_v35  ;;  %v844_v56 = vmul.f32 %v780_v45, %v1853_v14 }
 0x1f0   :  { %932 = vmatpush2.msra.mxu1 %v849_v39  ;;  %v843_v53 = vmul.f32 %v779_v44, %v1858_v7  ;;  %v1144_v7 = vld [vmem:[%s1902_s0 + $0x8] sm:$0xff]  ;;  %p1153_p4 = pnand %p1152_p3, %p1146_p0 }
 0x1f1   :  { %933 = vmatprep.subr.mxu1 %v848_v62 }
 0x1f2   :  { %934 = vmatpush2.msra.mxu1 %v847_v40 }
 0x1f3   :  { %935 = vmatprep.subr.mxu1 %v846_v18 }
 0x1f4   :  { %936 = vmatpush2.msra.mxu1 %v845_v34 }
 0x1f5   :  { %937 = vmatprep.subr.mxu1 %v844_v56 }
 0x1f6   :  { %938 = vmatpush2.msra.mxu1 %v843_v53 }
 0x1f7   :  { %940 = vmatmul.mubr.f32.vlgmr.msra.gmra.mxu1 %v59_v27 }
 0x2b7   :  { %v941_v17 = vpop.f32.mrf.mxu1 }
 0x2b8   :  { %v951_v4 = vmul.f32 %v949_v42, %v941_v17 }
 0x2b9   :  { %v943_v9 = vpop.f32.mrf.mxu1 }
 0x2ba   :  { %v953_v14 = vadd.f32 %v1143_v41, %v951_v4  ;;  %v952_v22 = vmul.f32 %v949_v42, %v943_v9 }
 0x2bc   :  { %v954_v36 = vadd.f32 %v1144_v7, %v952_v22  ;;  %v960_v50 = vadd.f32 %v958_v61, %v953_v14 }
 0x2be   :  { %v961_v57 = vadd.f32 %v958_v61, %v954_v36  ;;  %962 = vst [vmem:[#allocation2] sm:$0xff] %v960_v50 }
 0x2c0   :  { %963 = vst [vmem:[#allocation2 + $0x8] sm:$0xff] %v961_v57 }
 0x2c1   :  { %1156 = shalt.err (!%p1153_p4)
}
 0x2c2   :  { %973 = dma.vmem_to_hbm [thread:$0]  %s971_s14, 256, %s1909_s7, [#allocation3]  }
 0x2c3   :  { %1165 = dma.done.wait [#allocation3], 256  }
 0x2c4   :  { %1166 = vsyncadd [#allocation3], 4294967040 }
 0x2c5   :  { %977 = vsyncpa [#allocation3], 1 }

</bundles_post_ra>
